<compile_context>
chip_gen: v6e
topology: v6e:2x2x1
jax: 0.10.0
libtpu: 0.0.40
codegen_flags: <defaults>
</compile_context>

<pallas_src>
import jax
import jax.numpy as jnp
from jax.experimental import pallas as pl
from jax.experimental.pallas import tpu as pltpu


def _drop_kernel(x_ref, m_ref, o_ref):
    # Pure VPU elementwise multiply on a lane-dense tile; the mask is cast to
    # x.dtype here (trace-time branch) so narrow mask dtypes never force a
    # materialized cast pass in HBM.
    x = x_ref[...]
    m = m_ref[...]
    if m.dtype != x.dtype:
        m = m.astype(x.dtype)
    o_ref[...] = x * m


def _generation_params():
    """(target block bytes per operand, vmem_limit_bytes) per TPU generation."""
    try:
        vmem_cap = int(pltpu.get_tpu_info().vmem_capacity_bytes)
    except Exception:
        vmem_cap = 64 * 1024 * 1024  # be conservative (v7x-like)
    if vmem_cap >= 128 * 1024 * 1024:
        # v5e / v6e: 128 MiB physical VMEM -> bigger blocks, more headroom.
        return 4 * 1024 * 1024, 48 * 1024 * 1024
    # v7x (64 MiB per TC, both TCs active under megacore) or unknown.
    return 2 * 1024 * 1024, 32 * 1024 * 1024


def _choose_tile_rows(rows, m_rows, last, itemsize, target_bytes):
    """Rows per block. Returns None if the broadcast layout can't be expressed."""
    # Upper bound from the per-operand VMEM budget.
    cap = max(8, target_bytes // (last * itemsize))
    # Keep >= 4 grid steps when there is enough data: both v7x TensorCores get
    # work and the DMA pipeline has iterations to overlap.
    if rows >= 4 * 32:
        cap = min(cap, max(32, rows // 4))

    if m_rows == rows:
        # Plain elementwise path; a ragged final grid block is fine.
        if rows < 32:
            return rows  # full extent: always a legal block shape
        return max(32, (min(cap, rows) // 32) * 32)

    # Broadcast path: mask block must tile m_rows exactly (so x block i lines
    # up with mask block i % m_blocks) and be sublane-aligned.
    if m_rows % 8 != 0:
        return None
    best = 8
    d = 8
    limit = min(m_rows, cap)
    while d <= limit:
        if m_rows % d == 0:
            best = d
        d += 8
    return best


def _drop_2d(x2d, m2d, *, tile_rows, vmem_limit):
    """x2d * broadcast(m2d) for lane-dense slabs (rows,last) / (m_rows,last)."""
    rows, last = x2d.shape
    m_rows = m2d.shape[0]
    m_blocks = pl.cdiv(m_rows, tile_rows)
    grid = (pl.cdiv(rows, tile_rows),)

    if m_rows == rows:
        mask_map = lambda i: (i, 0)
    else:
        # Cyclic revisit of the (small) mask; with m_blocks == 1 the mask block
        # index never changes, so it stays VMEM-resident across all grid steps.
        mask_map = lambda i: (i % m_blocks, 0)

    bytes_accessed = (2 * rows * last * x2d.dtype.itemsize
                      + m_rows * last * m2d.dtype.itemsize)

    # TODO(synk): add input_output_aliases={0: 0} when the caller can donate x.
    return pl.pallas_call(
        _drop_kernel,
        out_shape=jax.ShapeDtypeStruct((rows, last), x2d.dtype),
        grid_spec=pltpu.PrefetchScalarGridSpec(
            num_scalar_prefetch=0,
            grid=grid,
            in_specs=[
                pl.BlockSpec((tile_rows, last), lambda i: (i, 0)),
                pl.BlockSpec((tile_rows, last), mask_map),
            ],
            out_specs=pl.BlockSpec((tile_rows, last), lambda i: (i, 0)),
        ),
        compiler_params=pltpu.CompilerParams(
            dimension_semantics=("parallel",),   # megacore sharding on v7x
            vmem_limit_bytes=vmem_limit,
        ),
        cost_estimate=pl.CostEstimate(
            flops=rows * last, transcendentals=0, bytes_accessed=bytes_accessed),
    )(x2d, m2d)


def drop_forward(x, mask):
    """x * mask where mask is either x-shaped or covers x's trailing axes."""
    orig_shape = x.shape
    n = x.size
    mn = mask.size
    assert n % mn == 0

    # Widest lane-dense last dim dividing the mask element count, so both
    # reshapes are free (metadata only) and DMA rows are long and contiguous.
    last = None
    for cand in (1024, 512, 256, 128):
        if mn % cand == 0:
            last = cand
            break

    target_bytes, vmem_limit = _generation_params()

    if last is not None:
        rows = n // last
        m_rows = mn // last
        tile_rows = _choose_tile_rows(rows, m_rows, last,
                                      x.dtype.itemsize, target_bytes)
        if tile_rows is not None:
            out2d = _drop_2d(x.reshape(rows, last), mask.reshape(m_rows, last),
                             tile_rows=tile_rows, vmem_limit=vmem_limit)
            return out2d.reshape(orig_shape)

    if mn != n:
        # TODO(synk): masks too small / misaligned to tile lane-dense are
        # materialized once before the kernel.
        lead = (1,) * max(0, x.ndim - mask.ndim)
        m_full = jnp.broadcast_to(mask.reshape(lead + mask.shape), x.shape)
        return drop_forward(x, m_full)

    # Element count not a multiple of 128: run the kernel on the aligned
    # prefix (no full-array jnp.pad) and handle the tiny tail in plain jnp.
    xf = x.reshape(-1)
    mf = mask.reshape(-1)
    n_main = (n // 128) * 128
    tail = xf[n_main:] * mf[n_main:].astype(x.dtype)
    if n_main == 0:
        return tail.reshape(orig_shape)
    main = drop_forward(xf[:n_main], mf[:n_main]).reshape(-1)
    return jnp.concatenate([main, tail]).reshape(orig_shape)


class Drop:
    """JAX/Pallas equivalent of the PyTorch `drop` nn.Module."""

    def __init__(self, mask):
        self.mask = mask

    def __call__(self, x):
        m = self.mask
        if m.shape == x.shape:
            return drop_forward(x, m)
        # Strip leading length-1 axes; if what remains matches the trailing
        # axes of x exactly, the broadcast is over leading axes only and is
        # expressed through the mask BlockSpec (no materialized broadcast).
        core = tuple(m.shape)
        while core and core[0] == 1:
            core = core[1:]
        if (len(core) <= x.ndim
                and core == tuple(x.shape[x.ndim - len(core):])
                and m.size >= 1 and x.size % m.size == 0):
            return drop_forward(x, m.reshape(core))
        # TODO(synk): general broadcast patterns (interior size-1 axes) still
        # materialize the broadcast mask once before the kernel.
        return drop_forward(x, jnp.broadcast_to(m, x.shape))


if __name__ == "__main__":
    key = jax.random.PRNGKey(0)
    kx, km, kx2, km2 = jax.random.split(key, 4)

    # Primary check: full-shape mask (the module's canonical use).
    B, C, H, W = 2, 4, 16, 16
    x = jax.random.normal(kx, (B, C, H, W), dtype=jnp.float32)
    keep_prob = 0.5
    mask = (jax.random.uniform(km, (B, C, H, W)) < keep_prob).astype(jnp.float32) / keep_prob

    module = Drop(mask)
    out = jax.block_until_ready(module(x))
    ref = x * mask
    assert out.shape == x.shape
    assert jnp.allclose(out, ref), "mismatch vs reference (full-shape mask)"

    # Secondary check: leading-axis-broadcast mask handled via the BlockSpec
    # index_map (no materialized broadcast on the hot path).
    x2 = jax.random.normal(kx2, (2, 8, 32, 32), dtype=jnp.float32)
    mask2 = (jax.random.uniform(km2, (8, 32, 32)) < keep_prob).astype(jnp.float32) / keep_prob
    out2 = jax.block_until_ready(Drop(mask2)(x2))
    ref2 = x2 * mask2
    assert out2.shape == x2.shape
    assert jnp.allclose(out2, ref2), "mismatch vs reference (broadcast mask)"

    print("KERNEL_OK")
</pallas_src>

<mosaic_0001>
module attributes {stable_mosaic.version = 11 : i64} {
  func.func @_drop_kernel(%arg0: i32, %arg1: memref<2x1024xf32, #tpu.memory_space<vmem>>, %arg2: memref<2x1024xf32, #tpu.memory_space<vmem>>, %arg3: memref<2x1024xf32, #tpu.memory_space<vmem>>) attributes {dimension_semantics = [#tpu.dimension_semantics<parallel>], iteration_bounds = array<i64: 1>, scalar_prefetch = 0 : i64, scratch_operands = 0 : i64, tpu.core_type = #tpu.core_type<tc>, window_params = [{transform_indices = @transform_0, window_bounds = array<i64: 2, 1024>}, {transform_indices = @transform_1, window_bounds = array<i64: 2, 1024>}, {transform_indices = @transform_2, window_bounds = array<i64: 2, 1024>}]} {
    %c0 = arith.constant 0 : index
    %c0_0 = arith.constant 0 : index
    %0 = vector.load %arg1[%c0, %c0_0] : memref<2x1024xf32, #tpu.memory_space<vmem>>, vector<2x1024xf32>
    %c0_1 = arith.constant 0 : index
    %c0_2 = arith.constant 0 : index
    %1 = vector.load %arg2[%c0_1, %c0_2] : memref<2x1024xf32, #tpu.memory_space<vmem>>, vector<2x1024xf32>
    %2 = arith.mulf %0, %1 : vector<2x1024xf32>
    %c0_3 = arith.constant 0 : index
    %c0_4 = arith.constant 0 : index
    %3 = vector.load %arg3[%c0_3, %c0_4] : memref<2x1024xf32, #tpu.memory_space<vmem>>, vector<2x1024xf32>
    tpu.vector_store %arg3[%c0_3, %c0_4], %2 {strides = array<i32>} : memref<2x1024xf32, #tpu.memory_space<vmem>>, vector<2x1024xf32>,
    return
  }
  func.func @transform_0(%arg0: i32) -> (i32, i32) {
    %c0_i32 = arith.constant 0 : i32
    %c0_i32_0 = arith.constant 0 : i32
    return %arg0, %c0_i32 : i32, i32
  }
  func.func @transform_1(%arg0: i32) -> (i32, i32) {
    %c0_i32 = arith.constant 0 : i32
    %c0_i32_0 = arith.constant 0 : i32
    return %arg0, %c0_i32 : i32, i32
  }
  func.func @transform_2(%arg0: i32) -> (i32, i32) {
    %c0_i32 = arith.constant 0 : i32
    %c0_i32_0 = arith.constant 0 : i32
    return %arg0, %c0_i32 : i32, i32
  }
}

</mosaic_0001>

<bundles_post_ra>
// kernel: tpu_custom_call.1
= control target key start
LH: loop header
LB: loop body
LE: loop exit
PB: predicated region body
PF: predicated region fallthrough
CT: control target
= control target key end

     0   :  { %7 = vsyncpa [#allocation3], 0  ;;  %s156_s0 = inlined_call_operand.hbm [shape: f32[2,1024], index: 0, kind: input, shape index: {}]   ;;  %s157_s1 = inlined_call_operand.hbm [shape: f32[2,1024], index: 1, kind: input, shape index: {}]   ;;  %s158_s2 = inlined_call_operand.hbm [shape: f32[2,1024], index: 2, kind: output, shape index: {}]  }
   0x1   :  { %8 = vsyncpa [#allocation6], 0 }
   0x2   :  { %9 = vsyncpa [#allocation4], 0  ;;  %s129_s9 = smov [#allocation2]   ;;  %s130_s11 = smov [#allocation5]  }
   0x3   :  { %s16_s10 = sshll.u32 %s129_s9, 4  ;;  %s26_s12 = sshll.u32 %s130_s11, 4  ;;  %s17_s10 = int_to_ptr.vmem [resolvable:$true] %s16_s10  ;;  %s27_s12 = int_to_ptr.vmem [resolvable:$true] %s26_s12 }
   0x4   :  { %s71_s13 = scalar_lea.vmem %s17_s10, 256  ;;  %p76_p1 = scmp.lt.s32.totalorder %s17_s10, %s17_s10 }
   0x5   :  { %p72_p0 = scmp.ne.s32.totalorder %s17_s10, %s71_s13  ;;  %p77_p2 = scmp.lt.s32.totalorder %s71_s13, %s71_s13 }
   0x7   :  { %p78_p3 = por %p77_p2, %p76_p1 }
   0x9   :  { %p79_p4 = pnand %p78_p3, %p72_p0 }
   0xb   :  { %82 = shalt.err (!%p79_p4)
}
   0xc   :  { %19 = dma.hbm_to_vmem [thread:$0]  %s156_s0, 256, %s17_s10, [#allocation3]  }
   0xd   :  { %s91_s16 = scalar_lea.vmem %s27_s12, 256  ;;  %p96_p6 = scmp.lt.s32.totalorder %s27_s12, %s27_s12 }
   0xe   :  { %p92_p5 = scmp.ne.s32.totalorder %s27_s12, %s91_s16  ;;  %p97_p7 = scmp.lt.s32.totalorder %s91_s16, %s91_s16 }
  0x10   :  { %p98_p8 = por %p97_p7, %p96_p6 }
  0x12   :  { %p99_p9 = pnand %p98_p8, %p92_p5 }
  0x14   :  { %102 = shalt.err (!%p99_p9)
}
  0x15   :  { %29 = dma.hbm_to_vmem [thread:$0]  %s157_s1, 256, %s27_s12, [#allocation6]  }
  0x16   :  { %123 = dma.done.wait [#allocation3], 256  }
  0x17   :  { %124 = vsyncadd [#allocation3], 4294967040 }
  0x18   :  { %125 = dma.done.wait [#allocation6], 256  }
  0x19   :  { %126 = vsyncadd [#allocation6], 4294967040  ;;  %s131_s19 = smov [#allocation7]   ;;  %v36_v0 = vld [vmem:[#allocation2] sm:$0xff]  ;;  %v38_v1 = vld [vmem:[#allocation5] sm:$0xff] }
  0x1a   :  { %s50_s20 = sshll.u32 %s131_s19, 4  ;;  %v37_v2 = vld [vmem:[#allocation2 + $0x8] sm:$0xff]  ;;  %v40_v3 = vmul.f32 %v38_v1, %v36_v0  ;;  %v39_v4 = vld [vmem:[#allocation5 + $0x8] sm:$0xff]  ;;  %s51_s20 = int_to_ptr.vmem [resolvable:$true] %s50_s20 }
  0x1b   :  { %v41_v5 = vmul.f32 %v39_v4, %v37_v2  ;;  %s103_s0 = scalar_lea.vmem %s51_s20, 256  ;;  %p108_p11 = scmp.lt.s32.totalorder %s51_s20, %s51_s20 }
  0x1c   :  { %42 = vst [vmem:[#allocation7] sm:$0xff] %v40_v3  ;;  %p104_p10 = scmp.ne.s32.totalorder %s51_s20, %s103_s0  ;;  %p109_p12 = scmp.lt.s32.totalorder %s103_s0, %s103_s0 }
  0x1d   :  { %43 = vst [vmem:[#allocation7 + $0x8] sm:$0xff] %v41_v5 }
  0x1e   :  { %p110_p13 = por %p109_p12, %p108_p11 }
  0x20   :  { %p111_p0 = pnand %p110_p13, %p104_p10 }
  0x22   :  { %114 = shalt.err (!%p111_p0)
}
  0x23   :  { %53 = dma.vmem_to_hbm [thread:$0]  %s51_s20, 256, %s158_s2, [#allocation4]  }
  0x24   :  { %127 = dma.done.wait [#allocation4], 256  }
  0x25   :  { %128 = vsyncadd [#allocation4], 4294967040 }
  0x26   :  { %57 = vsyncpa [#allocation3], 1 }
  0x27   :  { %58 = vsyncpa [#allocation6], 1 }
  0x28   :  { %59 = vsyncpa [#allocation4], 1 }

</bundles_post_ra>
